<compile_context>
chip_gen: v5e
topology: v5e:2x2
jax: 0.10.0
libtpu: 0.0.40
codegen_flags: <defaults>
</compile_context>

<pallas_src>
import jax
import jax.numpy as jnp
from jax.experimental import pallas as pl
from jax.experimental.pallas import tpu as pltpu

# ---- module configuration (DilationBlock(input_size=8, int_size=16,
#      output_size=16, kernel_size=4, dilation=2, activation='relu')) --------
INPUT_SIZE = 8
INT_SIZE = 16
OUTPUT_SIZE = 16
KS = 4                       # 'kernel_size' constructor arg
K = 2 * KS + 1               # actual Conv1d kernel width  (= 9)
DILATION = 2
PAD = KS * DILATION          # = 8
N = 2                        # batch
T = 16                       # sequence length
NT = N * T                   # batch stacked along sublanes
TP = T + 2 * PAD             # per-sequence padded length


def dilation_block_kernel(xunf_ref, w0_ref, b0_ref, w1_ref, b1_ref,
                          wds_ref, bds_ref, out_ref):
    """Single invocation; both batch elements stacked along the sublane axis."""
    x_unf = xunf_ref[...]                                   # (NT, K*Cin) = (32, 72)

    # ---- conv0: one im2col matmul + bias + ReLU -----------------------------
    h = jnp.dot(x_unf, w0_ref[...], preferred_element_type=jnp.float32)
    h = jnp.maximum(h + b0_ref[...], 0.0)                   # (NT, Cint) = (32, 16)
    # TODO(synk): Dropout2d is identity at inference time; omitted.

    # ---- conv1: build im2col in registers, then one matmul + bias + ReLU ----
    zpad = jnp.zeros((PAD, INT_SIZE), jnp.float32)
    batch_blocks = []
    for n in range(N):                                      # N = 2, fully unrolled
        hn = h[n * T:(n + 1) * T, :]                        # (T, Cint), aligned slice
        hp = jnp.concatenate([zpad, hn, zpad], axis=0)      # (TP, Cint)
        taps = [hp[k * DILATION:k * DILATION + T, :] for k in range(K)]
        batch_blocks.append(jnp.concatenate(taps, axis=1))  # (T, K*Cint)
    h_unf = jnp.concatenate(batch_blocks, axis=0)           # (NT, K*Cint) = (32, 144)

    out = jnp.dot(h_unf, w1_ref[...], preferred_element_type=jnp.float32)
    out = jnp.maximum(out + b1_ref[...], 0.0)               # (NT, Cout)

    # ---- residual (1x1 conv): centre-tap block of x_unf is x itself ---------
    xc = x_unf[:, KS * INPUT_SIZE:(KS + 1) * INPUT_SIZE]    # (NT, Cin)
    res = jnp.dot(xc, wds_ref[...],
                  preferred_element_type=jnp.float32) + bds_ref[...]

    # ---- final activation, single store -------------------------------------
    out_ref[...] = jnp.maximum(out + res, 0.0)


@jax.jit
def dilation_block(x_ntc, w0, b0, w1, b1, wds, bds):
    """x_ntc: (N, T, Cin); w0 (K,Cin,Cint); w1 (K,Cint,Cout); wds (Cin,Cout);
    biases shaped (1, C).  Returns (N, T, Cout)."""
    # conv0's im2col in plain JAX (input is ~2 KiB; unfolded ~9 KiB).
    xpad = jnp.pad(x_ntc, ((0, 0), (PAD, PAD), (0, 0)))             # (N, TP, Cin)
    cols = [xpad[:, k * DILATION:k * DILATION + T, :] for k in range(K)]
    x_unf = jnp.concatenate(cols, axis=-1).reshape(NT, K * INPUT_SIZE)  # (32, 72)
    w0_unf = w0.reshape(K * INPUT_SIZE, INT_SIZE)                   # (72, 16)
    w1_unf = w1.reshape(K * INT_SIZE, OUTPUT_SIZE)                  # (144, 16)

    vmem = pltpu.MemorySpace.VMEM
    out_flat = pl.pallas_call(
        dilation_block_kernel,
        out_shape=jax.ShapeDtypeStruct((NT, OUTPUT_SIZE), jnp.float32),
        in_specs=[pl.BlockSpec(memory_space=vmem)] * 7,
        out_specs=pl.BlockSpec(memory_space=vmem),
    )(x_unf, w0_unf, b0, w1_unf, b1, wds, bds)
    return out_flat.reshape(N, T, OUTPUT_SIZE)


# ---- deterministic parameter construction (weight_norm folded) -------------
def make_params(key):
    k0, k1, k2, k3, k4, k5 = jax.random.split(key, 6)

    def wn_weight(k, shape):
        # weight_norm: effective w = g * v / ||v||_(in,k)  per output channel
        v = 0.01 * jax.random.normal(k, shape, jnp.float32)
        nrm = jnp.sqrt(jnp.sum(v * v, axis=(1, 2), keepdims=True)) + 1e-12
        g = 1.5 * nrm
        return g * v / nrm

    w0_oik = wn_weight(k0, (INT_SIZE, INPUT_SIZE, K))         # (Cout, Cin, K)
    w1_oik = wn_weight(k1, (OUTPUT_SIZE, INT_SIZE, K))
    wds_oik = 0.01 * jax.random.normal(k2, (OUTPUT_SIZE, INPUT_SIZE, 1), jnp.float32)
    b0 = 0.1 * jax.random.normal(k3, (INT_SIZE,), jnp.float32)
    b1 = 0.1 * jax.random.normal(k4, (OUTPUT_SIZE,), jnp.float32)
    bds = 0.1 * jax.random.normal(k5, (OUTPUT_SIZE,), jnp.float32)
    return w0_oik, b0, w1_oik, b1, wds_oik, bds


# ---- pure-JAX reference (PyTorch NCT semantics) -----------------------------
def ref_forward(x_nct, w0_oik, b0, w1_oik, b1, wds_oik, bds):
    def dconv(x, w, b):
        y = jax.lax.conv_general_dilated(
            x, w, window_strides=(1,), padding=[(PAD, PAD)],
            rhs_dilation=(DILATION,), dimension_numbers=('NCH', 'OIH', 'NCH'))
        return y + b[None, :, None]

    h = jnp.maximum(dconv(x_nct, w0_oik, b0), 0.0)
    o = jnp.maximum(dconv(h, w1_oik, b1), 0.0)
    res = jax.lax.conv_general_dilated(
        x_nct, wds_oik, window_strides=(1,), padding=[(0, 0)],
        dimension_numbers=('NCH', 'OIH', 'NCH')) + bds[None, :, None]
    return jnp.maximum(o + res, 0.0)


if __name__ == "__main__":
    key = jax.random.PRNGKey(0)
    kx, kp = jax.random.split(key)
    x_nct = jax.random.normal(kx, (N, INPUT_SIZE, T), jnp.float32)  # PyTorch NCT
    w0_oik, b0, w1_oik, b1, wds_oik, bds = make_params(kp)

    # rearrange to the kernel layout
    x_ntc = jnp.transpose(x_nct, (0, 2, 1))                 # (N, T, Cin)
    w0 = jnp.transpose(w0_oik, (2, 1, 0))                   # (K, Cin, Cint)
    w1 = jnp.transpose(w1_oik, (2, 1, 0))                   # (K, Cint, Cout)
    wds = jnp.transpose(wds_oik[:, :, 0], (1, 0))           # (Cin, Cout)

    out_ntc = dilation_block(x_ntc, w0, b0[None, :], w1, b1[None, :],
                             wds, bds[None, :])
    out_nct = jnp.transpose(out_ntc, (0, 2, 1))             # back to NCT
    jax.block_until_ready(out_nct)

    ref = ref_forward(x_nct, w0_oik, b0, w1_oik, b1, wds_oik, bds)
    assert out_nct.shape == (N, OUTPUT_SIZE, T)
    assert jnp.allclose(out_nct, ref, atol=1e-4, rtol=1e-4), "mismatch vs reference"
    print("KERNEL_OK")
</pallas_src>

<mosaic_0001>
module attributes {stable_mosaic.version = 11 : i64} {
  func.func @dilation_block_kernel(%arg0: memref<32x72xf32, #tpu.memory_space<vmem>>, %arg1: memref<72x16xf32, #tpu.memory_space<vmem>>, %arg2: memref<1x16xf32, #tpu.memory_space<vmem>>, %arg3: memref<144x16xf32, #tpu.memory_space<vmem>>, %arg4: memref<1x16xf32, #tpu.memory_space<vmem>>, %arg5: memref<8x16xf32, #tpu.memory_space<vmem>>, %arg6: memref<1x16xf32, #tpu.memory_space<vmem>>, %arg7: memref<32x16xf32, #tpu.memory_space<vmem>>) attributes {dimension_semantics = [], scalar_prefetch = 0 : i64, scratch_operands = 0 : i64, tpu.core_type = #tpu.core_type<tc>} {
    %c0 = arith.constant 0 : index
    %c0_0 = arith.constant 0 : index
    %0 = vector.load %arg0[%c0, %c0_0] : memref<32x72xf32, #tpu.memory_space<vmem>>, vector<32x72xf32>
    %c0_1 = arith.constant 0 : index
    %c0_2 = arith.constant 0 : index
    %1 = vector.load %arg1[%c0_1, %c0_2] : memref<72x16xf32, #tpu.memory_space<vmem>>, vector<72x16xf32>
    %cst = arith.constant dense<0.000000e+00> : vector<32x16xf32>
    %2 = tpu.matmul %0, %1, %cst {dimension_numbers = #tpu.dot_dimension_numbers<[1], [0], [0], [1], [0, 0, 1, 1], [], []>} : vector<32x72xf32>, vector<72x16xf32>, vector<32x16xf32> -> vector<32x16xf32>
    %c0_3 = arith.constant 0 : index
    %c0_4 = arith.constant 0 : index
    %3 = vector.load %arg2[%c0_3, %c0_4] : memref<1x16xf32, #tpu.memory_space<vmem>>, vector<1x16xf32>
    %4 = vector.broadcast %3 : vector<1x16xf32> to vector<32x16xf32>
    %5 = arith.addf %2, %4 : vector<32x16xf32>
    %cst_5 = arith.constant 0.000000e+00 : f32
    %6 = vector.broadcast %cst_5 : f32 to vector<32x16xf32>
    %7 = arith.maximumf %5, %6 : vector<32x16xf32>
    %cst_6 = arith.constant 0.000000e+00 : f32
    %8 = vector.broadcast %cst_6 : f32 to vector<8x16xf32>
    %9 = vector.extract_strided_slice %7 {offsets = [0, 0], sizes = [16, 16], strides = [1, 1]} : vector<32x16xf32> to vector<16x16xf32>
    %10 = tpu.concatenate %8, %9, %8 in 0 : vector<8x16xf32>, vector<16x16xf32>, vector<8x16xf32> -> vector<32x16xf32>
    %11 = vector.extract_strided_slice %10 {offsets = [0, 0], sizes = [16, 16], strides = [1, 1]} : vector<32x16xf32> to vector<16x16xf32>
    %12 = vector.extract_strided_slice %10 {offsets = [2, 0], sizes = [16, 16], strides = [1, 1]} : vector<32x16xf32> to vector<16x16xf32>
    %13 = vector.extract_strided_slice %10 {offsets = [4, 0], sizes = [16, 16], strides = [1, 1]} : vector<32x16xf32> to vector<16x16xf32>
    %14 = vector.extract_strided_slice %10 {offsets = [6, 0], sizes = [16, 16], strides = [1, 1]} : vector<32x16xf32> to vector<16x16xf32>
    %15 = vector.extract_strided_slice %10 {offsets = [8, 0], sizes = [16, 16], strides = [1, 1]} : vector<32x16xf32> to vector<16x16xf32>
    %16 = vector.extract_strided_slice %10 {offsets = [10, 0], sizes = [16, 16], strides = [1, 1]} : vector<32x16xf32> to vector<16x16xf32>
    %17 = vector.extract_strided_slice %10 {offsets = [12, 0], sizes = [16, 16], strides = [1, 1]} : vector<32x16xf32> to vector<16x16xf32>
    %18 = vector.extract_strided_slice %10 {offsets = [14, 0], sizes = [16, 16], strides = [1, 1]} : vector<32x16xf32> to vector<16x16xf32>
    %19 = vector.extract_strided_slice %10 {offsets = [16, 0], sizes = [16, 16], strides = [1, 1]} : vector<32x16xf32> to vector<16x16xf32>
    %20 = tpu.concatenate %11, %12, %13, %14, %15, %16, %17, %18, %19 in 1 : vector<16x16xf32>, vector<16x16xf32>, vector<16x16xf32>, vector<16x16xf32>, vector<16x16xf32>, vector<16x16xf32>, vector<16x16xf32>, vector<16x16xf32>, vector<16x16xf32> -> vector<16x144xf32>
    %21 = vector.extract_strided_slice %7 {offsets = [16, 0], sizes = [16, 16], strides = [1, 1]} : vector<32x16xf32> to vector<16x16xf32>
    %22 = tpu.concatenate %8, %21, %8 in 0 : vector<8x16xf32>, vector<16x16xf32>, vector<8x16xf32> -> vector<32x16xf32>
    %23 = vector.extract_strided_slice %22 {offsets = [0, 0], sizes = [16, 16], strides = [1, 1]} : vector<32x16xf32> to vector<16x16xf32>
    %24 = vector.extract_strided_slice %22 {offsets = [2, 0], sizes = [16, 16], strides = [1, 1]} : vector<32x16xf32> to vector<16x16xf32>
    %25 = vector.extract_strided_slice %22 {offsets = [4, 0], sizes = [16, 16], strides = [1, 1]} : vector<32x16xf32> to vector<16x16xf32>
    %26 = vector.extract_strided_slice %22 {offsets = [6, 0], sizes = [16, 16], strides = [1, 1]} : vector<32x16xf32> to vector<16x16xf32>
    %27 = vector.extract_strided_slice %22 {offsets = [8, 0], sizes = [16, 16], strides = [1, 1]} : vector<32x16xf32> to vector<16x16xf32>
    %28 = vector.extract_strided_slice %22 {offsets = [10, 0], sizes = [16, 16], strides = [1, 1]} : vector<32x16xf32> to vector<16x16xf32>
    %29 = vector.extract_strided_slice %22 {offsets = [12, 0], sizes = [16, 16], strides = [1, 1]} : vector<32x16xf32> to vector<16x16xf32>
    %30 = vector.extract_strided_slice %22 {offsets = [14, 0], sizes = [16, 16], strides = [1, 1]} : vector<32x16xf32> to vector<16x16xf32>
    %31 = vector.extract_strided_slice %22 {offsets = [16, 0], sizes = [16, 16], strides = [1, 1]} : vector<32x16xf32> to vector<16x16xf32>
    %32 = tpu.concatenate %23, %24, %25, %26, %27, %28, %29, %30, %31 in 1 : vector<16x16xf32>, vector<16x16xf32>, vector<16x16xf32>, vector<16x16xf32>, vector<16x16xf32>, vector<16x16xf32>, vector<16x16xf32>, vector<16x16xf32>, vector<16x16xf32> -> vector<16x144xf32>
    %33 = tpu.concatenate %20, %32 in 0 : vector<16x144xf32>, vector<16x144xf32> -> vector<32x144xf32>
    %c0_7 = arith.constant 0 : index
    %c0_8 = arith.constant 0 : index
    %34 = vector.load %arg3[%c0_7, %c0_8] : memref<144x16xf32, #tpu.memory_space<vmem>>, vector<144x16xf32>
    %cst_9 = arith.constant dense<0.000000e+00> : vector<32x16xf32>
    %35 = tpu.matmul %33, %34, %cst_9 {dimension_numbers = #tpu.dot_dimension_numbers<[1], [0], [0], [1], [0, 0, 1, 1], [], []>} : vector<32x144xf32>, vector<144x16xf32>, vector<32x16xf32> -> vector<32x16xf32>
    %c0_10 = arith.constant 0 : index
    %c0_11 = arith.constant 0 : index
    %36 = vector.load %arg4[%c0_10, %c0_11] : memref<1x16xf32, #tpu.memory_space<vmem>>, vector<1x16xf32>
    %37 = vector.broadcast %36 : vector<1x16xf32> to vector<32x16xf32>
    %38 = arith.addf %35, %37 : vector<32x16xf32>
    %cst_12 = arith.constant 0.000000e+00 : f32
    %39 = vector.broadcast %cst_12 : f32 to vector<32x16xf32>
    %40 = arith.maximumf %38, %39 : vector<32x16xf32>
    %41 = vector.extract_strided_slice %0 {offsets = [0, 32], sizes = [32, 8], strides = [1, 1]} : vector<32x72xf32> to vector<32x8xf32>
    %c0_13 = arith.constant 0 : index
    %c0_14 = arith.constant 0 : index
    %42 = vector.load %arg5[%c0_13, %c0_14] : memref<8x16xf32, #tpu.memory_space<vmem>>, vector<8x16xf32>
    %cst_15 = arith.constant dense<0.000000e+00> : vector<32x16xf32>
    %43 = tpu.matmul %41, %42, %cst_15 {dimension_numbers = #tpu.dot_dimension_numbers<[1], [0], [0], [1], [0, 0, 1, 1], [], []>} : vector<32x8xf32>, vector<8x16xf32>, vector<32x16xf32> -> vector<32x16xf32>
    %c0_16 = arith.constant 0 : index
    %c0_17 = arith.constant 0 : index
    %44 = vector.load %arg6[%c0_16, %c0_17] : memref<1x16xf32, #tpu.memory_space<vmem>>, vector<1x16xf32>
    %45 = vector.broadcast %44 : vector<1x16xf32> to vector<32x16xf32>
    %46 = arith.addf %43, %45 : vector<32x16xf32>
    %47 = arith.addf %40, %46 : vector<32x16xf32>
    %cst_18 = arith.constant 0.000000e+00 : f32
    %48 = vector.broadcast %cst_18 : f32 to vector<32x16xf32>
    %49 = arith.maximumf %47, %48 : vector<32x16xf32>
    %c0_19 = arith.constant 0 : index
    %c0_20 = arith.constant 0 : index
    %50 = vector.load %arg7[%c0_19, %c0_20] : memref<32x16xf32, #tpu.memory_space<vmem>>, vector<32x16xf32>
    tpu.vector_store %arg7[%c0_19, %c0_20], %49 {strides = array<i32>} : memref<32x16xf32, #tpu.memory_space<vmem>>, vector<32x16xf32>,
    return
  }
}

</mosaic_0001>

<bundles_post_ra>
// kernel: dilation_block.1
= control target key start
LH: loop header
LB: loop body
LE: loop exit
PB: predicated region body
PF: predicated region fallthrough
CT: control target
= control target key end

     0   :  { %s798_s0 = inlined_call_operand.vmem [shape: f32[32,72], index: 0, kind: input, shape index: {}]   ;;  %s799_s1 = inlined_call_operand.vmem [shape: f32[72,16], index: 1, kind: input, shape index: {}]   ;;  %s800_s2 = inlined_call_operand.vmem [shape: f32[1,16], index: 2, kind: input, shape index: {}]   ;;  %s801_s3 = inlined_call_operand.vmem [shape: f32[144,16], index: 3, kind: input, shape index: {}]   ;;  %s802_s4 = inlined_call_operand.vmem [shape: f32[1,16], index: 4, kind: input, shape index: {}]   ;;  %s803_s5 = inlined_call_operand.vmem [shape: f32[8,16], index: 5, kind: input, shape index: {}]   ;;  %s804_s6 = inlined_call_operand.vmem [shape: f32[1,16], index: 6, kind: input, shape index: {}]   ;;  %s805_s7 = inlined_call_operand.hbm [shape: f32[32,16], index: 7, kind: output, shape index: {}]  }
   0x1   :  { %v39_v0 = vld [vmem:[%s799_s1 + $0x40] sm:$0xff]  ;;  %v38_v1 = vld [vmem:[%s799_s1 + $0x38] sm:$0xff]  ;;  %v37_v2 = vld [vmem:[%s799_s1 + $0x30] sm:$0xff] }
   0x2   :  { %64 = vmatpush.msra.mxu0 %v39_v0  ;;  %v36_v3 = vld [vmem:[%s799_s1 + $0x28] sm:$0xff] }
   0x4   :  { %65 = vmatpush.msra.mxu0 %v38_v1 }
   0x6   :  { %66 = vmatpush.msra.mxu0 %v37_v2 }
   0x7   :  { %12 = vsyncpa [#allocation3], 0  ;;  %v35_v4 = vld [vmem:[%s799_s1 + $0x20] sm:$0xff]  ;;  %v34_v5 = vld [vmem:[%s799_s1 + $0x18] sm:$0xff]  ;;  %vm44_vm0 = vcmask 588800   ;;  %s531_s23 = smov 96  }
   0x8   :  { %67 = vmatpush.msra.mxu0 %v36_v3  ;;  %v33_v6 = vld [vmem:[%s799_s1 + $0x10] sm:$0xff]  ;;  %v32_v7 = vld [vmem:[%s799_s1 + $0x8] sm:$0xff]  ;;  %v31_v8 = vld [vmem:[%s799_s1] sm:$0xff]  ;;  %vm156_vm1 = vcmask 130048   ;;  %v532_v22 = vmov 0.0   ;;  %vm93_vm2 = vcmask 1045504  }
   0x9   :  { %v27_v9 = vld [vmem:[%s798_s0] sm:$0xff]  ;;  %v28_v10 = vld [vmem:[%s798_s0 + $0x8] sm:$0xff]  ;;  %v620_v11 = vld [vmem:[%s798_s0 + $0x10] sm:$0xff]  ;;  %v641_v23 = vrot.slane %v532_v22, 2  ;;  %v653_v34 = vrot.slane %v532_v22, 6  ;;  %vm117_vm3 = vcmask 1041408  }
   0xa   :  { %68 = vmatpush.msra.mxu0 %v35_v4  ;;  %347 = vrot.lane.b32.xlu2 %v28_v10, %s531_s23  ;;  %v626_v12 = vld [vmem:[%s798_s0 + $0x18] sm:$0xff]  ;;  %v267_v13 = vld [vmem:[%s801_s3 + $0x88] sm:$0xff]  ;;  %v266_v14 = vld [vmem:[%s801_s3 + $0x80] sm:$0xff]  ;;  %s533_s0 = smov 64   ;;  %s535_s10 = smov 16   ;;  %v106_v39 = vrot.slane %v532_v22, 4 }
   0xb   :  { %345 = vrot.lane.b32.xlu0 %v27_v9, %s531_s23  ;;  %321 = vmatpush.msra.mxu2 %v267_v13  ;;  %v502_v15 = vld [vmem:[%s800_s2] ss:$0 sm:$0xff]  ;;  %s534_s2 = smov 80   ;;  %vm105_vm4 = vcmask 1043456   ;;  %s536_s11 = smov 48   ;;  %v264_v13 = vld [vmem:[%s801_s3 + $0x70] sm:$0xff] }
   0xc   :  { %69 = vmatpush.msra.mxu0 %v34_v5  ;;  %s537_s12 = smov 32   ;;  %s538_s13 = smov 112   ;;  %vm353_vm5 = vcmask 64512   ;;  %vm159_vm6 = vcmask 261120   ;;  %vm162_vm7 = vcmask 392192   ;;  %vm165_vm8 = vcmask 523264  }
   0xd   :  { %322 = vmatpush.msra.mxu2 %v266_v14  ;;  %v261_v14 = vld [vmem:[%s801_s3 + $0x58] sm:$0xff]  ;;  %vm168_vm9 = vcmask 654336   ;;  %vm171_vm10 = vcmask 785408   ;;  %vm174_vm11 = vcmask 916480   ;;  %s409_s25 = sshll.u32 %s805_s7, 4  ;;  %s540_s26 = smov 128   ;;  %s410_s25 = int_to_ptr.hbm [resolvable:$true] %s409_s25 }
   0xe   :  { %70 = vmatpush.msra.mxu0 %v33_v6  ;;  %s541_s27 = smov 8  }
  0x10   :  { %71 = vmatpush.msra.mxu0 %v32_v7 }
  0x12   :  { %72 = vmatpush.msra.mxu0 %v31_v8 }
  0x13   :  { %421 = vmatmul.msk.f32.vlgmr.msra.gmra.mxu0 %vm44_vm0, %v27_v9 }
  0x1b   :  { %422 = vmatmul.msk.f32.gmra.mxu0 %vm44_vm0, %v28_v10  ;;  %v265_v10 = vld [vmem:[%s801_s3 + $0x78] sm:$0xff] }
  0x1c   :  { %278 = vmatpush.msra.mxu1 %v265_v10 }
  0x1e   :  { %279 = vmatpush.msra.mxu1 %v264_v13 }
  0x23   :  { %423 = vmatmul.msk.f32.gmra.mxu0 %vm44_vm0, %v620_v11 }
  0x2b   :  { %424 = vmatmul.msk.f32.gmra.mxu0 %vm44_vm0, %v626_v12 }
  0x90   :  { %v74_v16 = vpop.f32.mrf.mxu0 }
  0x91   :  { %v75_v17 = vadd.f32 %v502_v15, %v74_v16  ;;  %v260_v16 = vld [vmem:[%s801_s3 + $0x50] sm:$0xff] }
  0x93   :  { %v638_v18 = vmax.f32 %v75_v17, 0.0  ;;  %v346_v17 = vpop.permute.xlu0 %345 }
  0x95   :  { %v95_v24 = vrot.slane %v638_v18, 2  ;;  %v119_v35 = vrot.slane %v638_v18, 6  ;;  %v107_v40 = vrot.slane %v638_v18, 4 }
  0x97   :  { %v96_v30 = vsel %vm93_vm2, %v641_v23, %v95_v24  ;;  %v120_v41 = vsel %vm117_vm3, %v653_v34, %v119_v35  ;;  %v108_v46 = vsel %vm105_vm4, %v106_v39, %v107_v40 }
  0x98   :  { %v77_v19 = vpop.f32.mrf.mxu0 }
  0x99   :  { %v78_v20 = vadd.f32 %v502_v15, %v77_v19  ;;  %v259_v19 = vld [vmem:[%s801_s3 + $0x48] sm:$0xff] }
  0x9b   :  { %v87_v21 = vmax.f32 %v78_v20, 0.0  ;;  %v258_v20 = vld [vmem:[%s801_s3 + $0x40] sm:$0xff] }
  0x9d   :  { %425 = vmatmul.msk.f32.vlgmr.msra.gmra.mxu2 %vm156_vm1, %v87_v21  ;;  %v442_v25 = vpack.i.bf16 %v87_v21, %v638_v18  ;;  %v97_v26 = vrot.slane %v87_v21, 2  ;;  %v121_v27 = vrot.slane %v87_v21, 6  ;;  %v109_v36 = vrot.slane %v87_v21, 4  ;;  %v348_v21 = vpop.permute.xlu2 %347 }
  0x9f   :  { %443 = vrot.lane.b32.xlu1 %v442_v25, %s533_s0  ;;  %v98_v28 = vsel %vm93_vm2, %v95_v24, %v97_v26  ;;  %v135_v29 = vsel %vm93_vm2, %v97_v26, %v641_v23  ;;  %v122_v37 = vsel %vm117_vm3, %v119_v35, %v121_v27  ;;  %v110_v43 = vsel %vm105_vm4, %v107_v40, %v109_v36  ;;  %v255_v24 = vld [vmem:[%s801_s3 + $0x28] sm:$0xff]  ;;  %v254_v25 = vld [vmem:[%s801_s3 + $0x20] sm:$0xff]  ;;  %v253_v26 = vld [vmem:[%s801_s3 + $0x18] sm:$0xff] }
  0xa0   :  { %v80_v31 = vpop.f32.mrf.mxu0  ;;  %v462_v32 = vpack.i.bf16 %v135_v29, %v98_v28  ;;  %v447_v33 = vpack.i.bf16 %v98_v28, %v96_v30  ;;  %v457_v42 = vpack.i.bf16 %v122_v37, %v120_v41  ;;  %v142_v44 = vsel %vm105_vm4, %v109_v36, %v106_v39  ;;  %v251_v28 = vld [vmem:[%s801_s3 + $0x8] sm:$0xff]  ;;  %v250_v29 = vld [vmem:[%s801_s3] sm:$0xff] }
  0xa1   :  { %v81_v38 = vadd.f32 %v502_v15, %v80_v31  ;;  %v467_v48 = vpack.i.bf16 %v142_v44, %v110_v43  ;;  %v452_v49 = vpack.i.bf16 %v110_v43, %v108_v46  ;;  %v149_v51 = vsel %vm117_vm3, %v121_v27, %v653_v34  ;;  %v252_v27 = vld [vmem:[%s801_s3 + $0x10] sm:$0xff] }
  0xa2   :  { %463 = vrot.lane.b32.xlu2 %v462_v32, %s534_s2  ;;  %448 = vrot.lane.b32.xlu0 %v447_v33, %s535_s10  ;;  %v472_v54 = vpack.i.bf16 %v149_v51, %v122_v37 }
  0xa3   :  { %v666_v45 = vmax.f32 %v81_v38, 0.0 }
  0xa5   :  { %326 = vmatmul.f32.gmra.mxu2 %v532_v22  ;;  %v199_v53 = vrot.slane %v666_v45, 6  ;;  %v189_v61 = vrot.slane %v666_v45, 4  ;;  %v179_v0 = vrot.slane %v666_v45, 2 }
  0xa7   :  { %458 = vrot.lane.b32.xlu1 %v457_v42, %s536_s11  ;;  %v200_v57 = vsel %vm117_vm3, %v653_v34, %v199_v53  ;;  %v190_v1 = vsel %vm105_vm4, %v106_v39, %v189_v61  ;;  %v180_v4 = vsel %vm93_vm2, %v641_v23, %v179_v0 }
  0xa8   :  { %v83_v47 = vpop.f32.mrf.mxu0 }
  0xa9   :  { %v84_v50 = vadd.f32 %v502_v15, %v83_v47  ;;  %v340_v15 = vld [vmem:[%s803_s5] sm:$0xff] }
  0xaa   :  { %468 = vrot.lane.b32.xlu2 %v467_v48, %s531_s23  ;;  %453 = vrot.lane.b32.xlu0 %v452_v49, %s537_s12 }
  0xab   :  { %v89_v52 = vmax.f32 %v84_v50, 0.0  ;;  %377 = vmatpush.msra.mxu3 %v340_v15 }
  0xac   :  { %427 = vmatmul.msk.f32.vlgmr.msra.gmra.mxu3 %vm353_vm5, %v346_v17 }
  0xad   :  { %426 = vmatmul.msk.f32.gmra.mxu2 %vm156_vm1, %v89_v52  ;;  %v201_v55 = vrot.slane %v89_v52, 6  ;;  %v191_v56 = vrot.slane %v89_v52, 4  ;;  %v477_v60 = vpack.i.bf16 %v89_v52, %v666_v45  ;;  %v181_v62 = vrot.slane %v89_v52, 2 }
  0xaf   :  { %473 = vrot.lane.b32.xlu1 %v472_v54, %s538_s13  ;;  %v202_v58 = vsel %vm117_vm3, %v199_v53, %v201_v55  ;;  %v192_v63 = vsel %vm105_vm4, %v189_v61, %v191_v56  ;;  %v182_v3 = vsel %vm93_vm2, %v179_v0, %v181_v62  ;;  %v215_v6 = vsel %vm93_vm2, %v181_v62, %v641_v23  ;;  %v256_v23 = vld [vmem:[%s801_s3 + $0x30] sm:$0xff] }
  0xb0   :  { %v492_v59 = vpack.i.bf16 %v202_v58, %v200_v57  ;;  %v487_v2 = vpack.i.bf16 %v192_v63, %v190_v1  ;;  %v482_v5 = vpack.i.bf16 %v182_v3, %v180_v4  ;;  %v497_v7 = vpack.i.bf16 %v215_v6, %v182_v3 }
  0xb1   :  { %v222_v8 = vsel %vm105_vm4, %v191_v56, %v106_v39  ;;  %v229_v9 = vsel %vm117_vm3, %v201_v55, %v653_v34 }
  0xb2   :  { %493 = vrot.lane.b32.xlu2 %v492_v59, %s536_s11  ;;  %478 = vrot.lane.b32.xlu0 %v477_v60, %s533_s0 }
  0xb4   :  { %428 = vmatmul.msk.f32.gmra.mxu3 %vm353_vm5, %v348_v21 }
  0xb5   :  { %332 = vmatmul.f32.gmra.mxu2 %v532_v22  ;;  %v257_v22 = vld [vmem:[%s801_s3 + $0x38] sm:$0xff] }
  0xb7   :  { %488 = vrot.lane.b32.xlu1 %v487_v2, %s537_s12 }
  0xba   :  { %223 = vrot.lane.b32.xlu2 %v192_v63, %s531_s23  ;;  %483 = vrot.lane.b32.xlu0 %v482_v5, %s535_s10 }
  0xbf   :  { %498 = vrot.lane.b32.xlu1 %v497_v7, %s534_s2 }
  0xc2   :  { %225 = vrot.lane.b32.xlu2 %v222_v8, %s531_s23  ;;  %349 = vrot.lane.b32.xlu0 %v620_v11, %s531_s23  ;;  %v263_v11 = vld [vmem:[%s801_s3 + $0x68] sm:$0xff] }
  0xc3   :  { %280 = vmatpush.msra.mxu1 %v263_v11 }
  0xc7   :  { %230 = vrot.lane.b32.xlu1 %v202_v58, %s538_s13 }
  0xca   :  { %351 = vrot.lane.b32.xlu0 %v626_v12, %s531_s23  ;;  %v262_v12 = vld [vmem:[%s801_s3 + $0x60] sm:$0xff] }
  0xcb   :  { %281 = vmatpush.msra.mxu1 %v262_v12 }
  0xcd   :  { %282 = vmatpush.msra.mxu1 %v261_v14 }
  0xcf   :  { %232 = vrot.lane.b32.xlu1 %v229_v9, %s538_s13  ;;  %283 = vmatpush.msra.mxu1 %v260_v16 }
  0xd1   :  { %284 = vmatpush.msra.mxu1 %v259_v19 }
  0xd3   :  { %285 = vmatpush.msra.mxu1 %v258_v20 }
  0xd5   :  { %286 = vmatpush.msra.mxu1 %v257_v22 }
  0xd7   :  { %287 = vmatpush.msra.mxu1 %v256_v23 }
  0xd9   :  { %288 = vmatpush.msra.mxu1 %v255_v24 }
  0xdb   :  { %289 = vmatpush.msra.mxu1 %v254_v25 }
  0xdd   :  { %290 = vmatpush.msra.mxu1 %v253_v26 }
  0xdf   :  { %291 = vmatpush.msra.mxu1 %v252_v27 }
  0xe1   :  { %292 = vmatpush.msra.mxu1 %v251_v28 }
  0xe3   :  { %293 = vmatpush.msra.mxu1 %v250_v29 }
  0xfc   :  { %v464_v31 = vpop.permute.xlu2 %463 }
  0xfd   :  { %v465_v48 = vunpack.i.l.bf16 %v464_v31  ;;  %v466_v58 = vunpack.i.h.bf16 %v464_v31 }
 0x104   :  { %v469_v39 = vpop.permute.xlu2 %468 }
 0x105   :  { %v470_v51 = vunpack.i.l.bf16 %v469_v39  ;;  %v471_v62 = vunpack.i.h.bf16 %v469_v39  ;;  %v503_v39 = vld [vmem:[%s804_s6] ss:$0 sm:$0xff] }
 0x10c   :  { %v494_v2 = vpop.permute.xlu2 %493 }
 0x10d   :  { %v495_v8 = vunpack.i.l.bf16 %v494_v2  ;;  %v496_v21 = vunpack.i.h.bf16 %v494_v2 }
 0x111   :  { %v444_v30 = vpop.permute.xlu1 %443 }
 0x112   :  { %v445_v44 = vunpack.i.l.bf16 %v444_v30  ;;  %v446_v52 = vunpack.i.h.bf16 %v444_v30 }
 0x114   :  { %v449_v32 = vpop.permute.xlu0 %448  ;;  %v224_v22 = vpop.permute.xlu2 %223 }
 0x115   :  { %v451_v34 = vunpack.i.h.bf16 %v449_v32  ;;  %v450_v35 = vunpack.i.l.bf16 %v449_v32 }
 0x117   :  { %v158_v40 = vsel %vm156_vm1, %v638_v18, %v451_v34  ;;  %v157_v41 = vsel %vm156_vm1, 0.0, %v450_v35 }
 0x119   :  { %v459_v33 = vpop.permute.xlu1 %458 }
 0x11a   :  { %v461_v42 = vunpack.i.h.bf16 %v459_v33  ;;  %v460_v43 = vunpack.i.l.bf16 %v459_v33 }
 0x11c   :  { %v454_v36 = vpop.permute.xlu0 %453  ;;  %v226_v32 = vpop.permute.xlu2 %225 }
 0x11d   :  { %v456_v37 = vunpack.i.h.bf16 %v454_v36  ;;  %v455_v38 = vunpack.i.l.bf16 %v454_v36  ;;  %v504_v36 = vld [vmem:[%s802_s4] ss:$0 sm:$0xff]  ;;  %s539_s4 = smov [#allocation2]  }
 0x11e   :  { %s407_s6 = sshll.u32 %s539_s4, 4  ;;  %s408_s6 = int_to_ptr.vmem [resolvable:$true] %s407_s6 }
 0x11f   :  { %v160_v46 = vsel %vm159_vm6, %v157_v41, %v455_v38  ;;  %v161_v47 = vsel %vm159_vm6, %v158_v40, %v456_v37 }
 0x120   :  { %v163_v49 = vsel %vm162_vm7, %v160_v46, %v460_v43  ;;  %v164_v50 = vsel %vm162_vm7, %v161_v47, %v461_v42  ;;  %v324_v41 = vpop.f32.mrf.mxu2 }
 0x121   :  { %v474_v53 = vpop.permute.xlu1 %473  ;;  %v166_v18 = vsel %vm165_vm8, %v163_v49, %v445_v44  ;;  %v167_v57 = vsel %vm165_vm8, %v164_v50, %v446_v52 }
 0x122   :  { %v475_v54 = vunpack.i.l.bf16 %v474_v53  ;;  %v169_v55 = vsel %vm168_vm9, %v166_v18, %v465_v48  ;;  %v170_v61 = vsel %vm168_vm9, %v167_v57, %v466_v58  ;;  %v476_v63 = vunpack.i.h.bf16 %v474_v53 }
 0x123   :  { %v172_v56 = vsel %vm171_vm10, %v169_v55, %v470_v51  ;;  %v173_v1 = vsel %vm171_vm10, %v170_v61, %v471_v62 }
 0x124   :  { %v479_v59 = vpop.permute.xlu0 %478  ;;  %v175_v60 = vsel %vm174_vm11, %v172_v56, %v475_v54  ;;  %v176_v4 = vsel %vm174_vm11, %v173_v1, %v476_v63 }
 0x125   :  { %294 = vmatmul.f32.vlgmr.msra.gmra.mxu1 %v175_v60  ;;  %v480_v13 = vunpack.i.l.bf16 %v479_v59  ;;  %v481_v25 = vunpack.i.h.bf16 %v479_v59 }
 0x128   :  { %v327_v50 = vpop.f32.mrf.mxu2 }
 0x129   :  { %v489_v0 = vpop.permute.xlu1 %488 }
 0x12a   :  { %v490_v6 = vunpack.i.l.bf16 %v489_v0  ;;  %v491_v16 = vunpack.i.h.bf16 %v489_v0 }
 0x12c   :  { %v484_v3 = vpop.permute.xlu0 %483 }
 0x12d   :  { %v485_v5 = vunpack.i.l.bf16 %v484_v3  ;;  %297 = vmatmul.f32.gmra.mxu1 %v176_v4  ;;  %v486_v7 = vunpack.i.h.bf16 %v484_v3 }
 0x12f   :  { %v236_v9 = vsel %vm156_vm1, 0.0, %v485_v5  ;;  %v237_v14 = vsel %vm156_vm1, %v666_v45, %v486_v7  ;;  %v379_v37 = vpop.f32.mrf.mxu3 }
 0x130   :  { %v238_v10 = vsel %vm159_vm6, %v236_v9, %v490_v6  ;;  %v239_v20 = vsel %vm159_vm6, %v237_v14, %v491_v16  ;;  %v380_v43 = vadd.f32 %v503_v39, %v379_v37  ;;  %v330_v56 = vpop.f32.mrf.mxu2 }
 0x131   :  { %v240_v11 = vsel %vm162_vm7, %v238_v10, %v495_v8  ;;  %v499_v12 = vpop.permute.xlu1 %498  ;;  %v241_v24 = vsel %vm162_vm7, %v239_v20, %v496_v21 }
 0x132   :  { %v500_v15 = vunpack.i.l.bf16 %v499_v12  ;;  %v242_v17 = vsel %vm165_vm8, %v240_v11, %v480_v13  ;;  %v501_v45 = vunpack.i.h.bf16 %v499_v12  ;;  %v243_v29 = vsel %vm165_vm8, %v241_v24, %v481_v25 }
 0x134   :  { %v350_v19 = vpop.permute.xlu0 %349  ;;  %v244_v23 = vsel %vm168_vm9, %v242_v17, %v500_v15  ;;  %v245_v31 = vsel %vm168_vm9, %v243_v29, %v501_v45 }
 0x135   :  { %429 = vmatmul.msk.f32.gmra.mxu3 %vm353_vm5, %v350_v19  ;;  %v246_v27 = vsel %vm171_vm10, %v244_v23, %v224_v22  ;;  %v247_v34 = vsel %vm171_vm10, %v245_v31, %v226_v32 }
 0x137   :  { %v382_v51 = vpop.f32.mrf.mxu3 }
 0x138   :  { %v383_v53 = vadd.f32 %v503_v39, %v382_v51  ;;  %v333_v0 = vpop.f32.mrf.mxu2 }
 0x139   :  { %v231_v26 = vpop.permute.xlu1 %230 }
 0x13a   :  { %v248_v28 = vsel %vm174_vm11, %v246_v27, %v231_v26 }
 0x13b   :  { %300 = vmatmul.f32.gmra.mxu1 %v248_v28 }
 0x13c   :  { %v352_v30 = vpop.permute.xlu0 %351 }
 0x13d   :  { %430 = vmatmul.msk.f32.gmra.mxu3 %vm353_vm5, %v352_v30 }
 0x141   :  { %v233_v33 = vpop.permute.xlu1 %232 }
 0x142   :  { %v249_v35 = vsel %vm174_vm11, %v247_v34, %v233_v33 }
 0x143   :  { %303 = vmatmul.f32.gmra.mxu1 %v249_v35 }
 0x1a2   :  { %v295_v38 = vpop.f32.mrf.mxu1 }
 0x1a3   :  { %v296_v40 = vadd.f32 %v504_v36, %v295_v38 }
 0x1a5   :  { %v325_v42 = vadd.f32 %v324_v41, %v296_v40 }
 0x1a7   :  { %v336_v44 = vmax.f32 %v325_v42, 0.0 }
 0x1a9   :  { %v391_v46 = vadd.f32 %v380_v43, %v336_v44 }
 0x1aa   :  { %v298_v47 = vpop.f32.mrf.mxu1 }
 0x1ab   :  { %v395_v48 = vmax.f32 %v391_v46, 0.0  ;;  %v299_v49 = vadd.f32 %v504_v36, %v298_v47 }
 0x1ad   :  { %399 = vst.msk [vmem:[#allocation2] sm:$0xff] %vm156_vm1, %v395_v48  ;;  %v328_v52 = vadd.f32 %v327_v50, %v299_v49 }
 0x1af   :  { %v337_v18 = vmax.f32 %v328_v52, 0.0 }
 0x1b1   :  { %v392_v54 = vadd.f32 %v383_v53, %v337_v18 }
 0x1b3   :  { %v396_v55 = vmax.f32 %v392_v54, 0.0 }
 0x1b5   :  { %400 = vst.msk [vmem:[#allocation2 + $0x8] sm:$0xff] %vm156_vm1, %v396_v55 }
 0x1b8   :  { %v301_v57 = vpop.f32.mrf.mxu1  ;;  %v385_v58 = vpop.f32.mrf.mxu3 }
 0x1b9   :  { %v302_v59 = vadd.f32 %v504_v36, %v301_v57  ;;  %v386_v61 = vadd.f32 %v503_v39, %v385_v58 }
 0x1bb   :  { %v331_v60 = vadd.f32 %v330_v56, %v302_v59 }
 0x1bd   :  { %v338_v62 = vmax.f32 %v331_v60, 0.0 }
 0x1bf   :  { %v393_v63 = vadd.f32 %v386_v61, %v338_v62 }
 0x1c0   :  { %v304_v1 = vpop.f32.mrf.mxu1  ;;  %v388_v2 = vpop.f32.mrf.mxu3 }
 0x1c1   :  { %v397_v3 = vmax.f32 %v393_v63, 0.0  ;;  %v305_v4 = vadd.f32 %v504_v36, %v304_v1  ;;  %v389_v6 = vadd.f32 %v503_v39, %v388_v2 }
 0x1c3   :  { %401 = vst.msk [vmem:[#allocation2 + $0x10] sm:$0xff] %vm156_vm1, %v397_v3  ;;  %v334_v5 = vadd.f32 %v333_v0, %v305_v4 }
 0x1c5   :  { %v339_v7 = vmax.f32 %v334_v5, 0.0 }
 0x1c7   :  { %v394_v8 = vadd.f32 %v389_v6, %v339_v7 }
 0x1c9   :  { %v398_v9 = vmax.f32 %v394_v8, 0.0 }
 0x1cb   :  { %402 = vst.msk [vmem:[#allocation2 + $0x18] sm:$0xff] %vm156_vm1, %v398_v9 }
 0x1cc   :  { %415 = dma.vmem_to_hbm [thread:$0]  %s408_s6, 512, %s410_s25, [#allocation3], %s540_s26, %s540_s26, %s541_s27  }
 0x1cd   :  { %529 = dma.done.wait [#allocation3], 512  }
 0x1ce   :  { %530 = vsyncadd [#allocation3], 4294966784 }
 0x1cf   :  { %420 = vsyncpa [#allocation3], 1 }

</bundles_post_ra>
